<compile_context>
chip_gen: v7x
topology: tpu7x:2x2x1
jax: 0.10.0
libtpu: 0.0.40
codegen_flags: <defaults>
</compile_context>

<pallas_src>
import functools

import jax
import jax.numpy as jnp
from jax.experimental import pallas as pl
from jax.experimental.pallas import tpu as pltpu


# ----------------------------- kernel bodies -------------------------------

def _nwl_sum_kernel(x_ref, w_ref, o_ref, *, fold, feat):
    # x_ref: (TB, fold*feat) ; w_ref: (1, fold*feat) f32 ; o_ref: (TB, fold)
    prod = x_ref[...].astype(jnp.float32) * w_ref[...]          # exact f32 accumulate
    if fold == 1:
        s = jnp.sum(prod, axis=-1, keepdims=True)
    else:
        tb = prod.shape[0]
        s = jnp.sum(prod.reshape(tb, fold, feat), axis=-1)       # segmented lane reduce
    o_ref[...] = s.astype(o_ref.dtype)


def _nwl_sum_noalpha_kernel(x_ref, o_ref, *, fold, feat):
    # x_ref: (TB, fold*feat) ; o_ref: (TB, fold)
    xs = x_ref[...].astype(jnp.float32)
    if fold == 1:
        s = jnp.sum(xs, axis=-1, keepdims=True)
    else:
        tb = xs.shape[0]
        s = jnp.sum(xs.reshape(tb, fold, feat), axis=-1)
    o_ref[...] = s.astype(o_ref.dtype)


def _nwl_keepdim_kernel(x_ref, w_ref, o_ref):
    # x_ref: (TB, fold*feat) ; w_ref: (1, fold*feat) in x's compute dtype ; o_ref same shape as x
    o_ref[...] = (x_ref[...] * w_ref[...]).astype(o_ref.dtype)


# ------------------------------ tile helpers --------------------------------

def _sublane(dtype):
    # second-to-last block-dim granularity: 8 for 4-byte, 16 for 2-byte, 32 for 1-byte dtypes
    return {4: 8, 2: 16, 1: 32}.get(jnp.dtype(dtype).itemsize, 8)


def _vmem_capacity_bytes():
    try:
        cap = int(pltpu.get_tpu_info().vmem_capacity_bytes)
        if cap > 0:
            return cap
    except Exception:
        pass
    return 64 * 1024 * 1024   # conservative fallback (v7x per-core VMEM)


def _fold_factor(batch, feat):
    """Rows folded into the lane dim so a block row is 128 lanes wide (narrow F only)."""
    if feat <= 0 or feat >= 128 or 128 % feat != 0:
        return 1
    k = 128 // feat                       # F in {1,2,4,...,64} -> k is a power of two
    while k > 1 and batch % k != 0:
        k //= 2
    return k


def _choose_row_tile(n_rows, lane_width, x_itemsize, out_lane_width, out_itemsize,
                     budget_bytes, sub):
    """Byte-sized batch tile: big enough to hide the per-step cost, small enough for VMEM."""
    per_row = (lane_width * x_itemsize * 2          # x block, double-buffered
               + lane_width * 4                     # in-kernel f32 temporaries
               + out_lane_width * out_itemsize * 2)  # out block, double-buffered
    vmem_rows = budget_bytes // max(per_row, 1)
    target_rows = (8 * 1024 * 1024) // max(lane_width * x_itemsize, 1)   # ~8 MiB of x / step
    row_tile = max(sub, min(vmem_rows, target_rows, n_rows))

    # Prefer >= 4 grid steps (>= 2 per v7x TensorCore) while each step still moves >= ~256 KiB.
    min_rows = max(sub, (256 * 1024) // max(lane_width * x_itemsize, 1))
    while pl.cdiv(n_rows, row_tile) < 4:
        nxt = max(min_rows, row_tile // 2)
        if nxt >= row_tile:
            break
        row_tile = nxt

    if row_tile >= n_rows:
        return n_rows                                   # single full-extent (non-ragged) block
    return max(sub, (row_tile // sub) * sub)            # interior blocks must be sublane-aligned


# --------------------------------- wrapper ----------------------------------

def normalized_weighted_linear(x, alpha=None, *, use_alpha=True, keepdim=False,
                               alpha_activation="tanh", row_tile=None, out_dtype=None):
    """Pallas implementation of NormalizedWeightedLinearLayer.forward."""
    B, F = x.shape
    out_dtype = x.dtype if out_dtype is None else jnp.dtype(out_dtype)

    # Hoist the activation: tanh(alpha) computed once, in f32, in the wrapper (alpha is tiny).
    if use_alpha:
        assert alpha is not None and alpha.shape == (F,)
        a32 = alpha.astype(jnp.float32)
        w = jnp.tanh(a32) if alpha_activation == "tanh" else a32   # module falls back to Identity

    # Fold k rows into the lane dimension for narrow F (free row-major reshape).
    k = _fold_factor(B, F)
    lane = k * F
    n_rows = B // k
    x2 = x if k == 1 else x.reshape(n_rows, lane)

    keep = use_alpha and keepdim
    out_lane = lane if keep else k

    sub = max(_sublane(x.dtype), _sublane(out_dtype))
    vmem_cap = _vmem_capacity_bytes()
    vmem_limit = min(64 * 1024 * 1024, (vmem_cap * 3) // 4)   # 64 MiB on v5e/v6e, 48 MiB on v7x
    budget = (vmem_limit * 3) // 4                            # headroom for w / scratch / temps

    if row_tile is None:
        tb = _choose_row_tile(n_rows, lane, jnp.dtype(x.dtype).itemsize,
                              out_lane, out_dtype.itemsize, budget, sub)
    else:
        tb = min(int(row_tile), n_rows)
        if tb < n_rows:
            tb = max(sub, (tb // sub) * sub)

    grid = (pl.cdiv(n_rows, tb),)   # ragged last block: OK for a strictly row-wise op
    cparams = pltpu.CompilerParams(dimension_semantics=("parallel",),
                                   vmem_limit_bytes=vmem_limit)
    x_spec = pl.BlockSpec((tb, lane), lambda i: (i, 0))

    if not use_alpha:
        out = pl.pallas_call(
            functools.partial(_nwl_sum_noalpha_kernel, fold=k, feat=F),
            out_shape=jax.ShapeDtypeStruct((n_rows, k), out_dtype),
            grid=grid,
            in_specs=[x_spec],
            out_specs=pl.BlockSpec((tb, k), lambda i: (i, 0)),
            compiler_params=cparams,
        )(x2)
        return out.reshape(B, 1)

    if keep:
        # Elementwise multiply: keep sub-32-bit inputs in their native dtype (one extra
        # rounding of w), f32 inputs multiply in f32.
        w_dtype = jnp.float32 if jnp.dtype(x.dtype).itemsize >= 4 else x.dtype
        w_row = (jnp.tile(w, k) if k > 1 else w).astype(w_dtype).reshape(1, lane)
        out = pl.pallas_call(
            _nwl_keepdim_kernel,
            out_shape=jax.ShapeDtypeStruct((n_rows, lane), out_dtype),
            grid=grid,
            in_specs=[x_spec, pl.BlockSpec((1, lane), lambda i: (0, 0))],
            out_specs=pl.BlockSpec((tb, lane), lambda i: (i, 0)),
            compiler_params=cparams,
        )(x2, w_row)
        return out.reshape(B, F)

    # Weighted row-sum path (f32 accumulation in-kernel).
    w_row = (jnp.tile(w, k) if k > 1 else w).reshape(1, lane)     # stays f32
    out = pl.pallas_call(
        functools.partial(_nwl_sum_kernel, fold=k, feat=F),
        out_shape=jax.ShapeDtypeStruct((n_rows, k), out_dtype),
        grid=grid,
        in_specs=[x_spec, pl.BlockSpec((1, lane), lambda i: (0, 0))],
        out_specs=pl.BlockSpec((tb, k), lambda i: (i, 0)),
        compiler_params=cparams,
    )(x2, w_row)
    return out.reshape(B, 1)


# ----------------------------------- test ------------------------------------

if __name__ == "__main__":
    key = jax.random.PRNGKey(0)
    kx, ka, kx2, kx3, kx4 = jax.random.split(key, 5)

    batch = 8
    num_features = 32   # == len(feature_columns)

    x = jax.random.normal(kx, (batch, num_features), dtype=jnp.float32)
    # alpha ~ Uniform(0.5 - 0.001, 0.5 + 0.001), matching create_structure_param
    alpha = jax.random.uniform(ka, (num_features,), minval=0.5 - 0.001,
                               maxval=0.5 + 0.001, dtype=jnp.float32)
    w_ref = jnp.tanh(alpha)

    # 1) keepdim=False (default path, folded): (B, F) -> (B, 1)
    out = jax.block_until_ready(normalized_weighted_linear(x, alpha))
    ref = jnp.sum(x * w_ref, axis=-1, keepdims=True)
    assert out.shape == (batch, 1)
    assert jnp.allclose(out, ref, atol=1e-5, rtol=1e-5)

    # 2) keepdim=True (folded elementwise): (B, F) -> (B, F)
    out_k = jax.block_until_ready(normalized_weighted_linear(x, alpha, keepdim=True))
    assert out_k.shape == (batch, num_features)
    assert jnp.allclose(out_k, x * w_ref, atol=1e-5, rtol=1e-5)

    # 3) use_alpha=False: (B, F) -> (B, 1)
    out_na = jax.block_until_ready(normalized_weighted_linear(x, alpha, use_alpha=False))
    assert out_na.shape == (batch, 1)
    assert jnp.allclose(out_na, jnp.sum(x, axis=-1, keepdims=True), atol=1e-5, rtol=1e-5)

    # 4) Batch not divisible by the fold factor's maximum (exercises reduced fold k=2).
    x_b = jax.random.normal(kx2, (6, num_features), dtype=jnp.float32)
    out_b = jax.block_until_ready(normalized_weighted_linear(x_b, alpha))
    assert out_b.shape == (6, 1)
    assert jnp.allclose(out_b, jnp.sum(x_b * w_ref, axis=-1, keepdims=True),
                        atol=1e-5, rtol=1e-5)

    # 5) Multi-step grid with a ragged last block (no padding, masked OOB writes).
    x_c = jax.random.normal(kx3, (200, num_features), dtype=jnp.float32)
    out_c = jax.block_until_ready(normalized_weighted_linear(x_c, alpha, row_tile=8))
    assert out_c.shape == (200, 1)
    assert jnp.allclose(out_c, jnp.sum(x_c * w_ref, axis=-1, keepdims=True),
                        atol=1e-5, rtol=1e-5)

    # 6) Wide-feature path (no folding, F >= 128).
    F2 = 256
    x_d = jax.random.normal(kx4, (16, F2), dtype=jnp.float32)
    alpha_d = jax.random.uniform(ka, (F2,), minval=0.499, maxval=0.501, dtype=jnp.float32)
    out_d = jax.block_until_ready(normalized_weighted_linear(x_d, alpha_d))
    assert out_d.shape == (16, 1)
    assert jnp.allclose(out_d, jnp.sum(x_d * jnp.tanh(alpha_d), axis=-1, keepdims=True),
                        atol=1e-4, rtol=1e-5)

    # 7) Identity activation fallback (module uses nn.Identity for non-'tanh').
    out_id = jax.block_until_ready(
        normalized_weighted_linear(x, alpha, alpha_activation="identity"))
    assert jnp.allclose(out_id, jnp.sum(x * alpha, axis=-1, keepdims=True),
                        atol=1e-5, rtol=1e-5)

    print("KERNEL_OK")
</pallas_src>

<mosaic_0001>
module attributes {stable_mosaic.version = 11 : i64} {
  func.func @_nwl_sum_kernel(%arg0: i32, %arg1: memref<2x128xf32, #tpu.memory_space<vmem>>, %arg2: memref<1x128xf32, #tpu.memory_space<vmem>>, %arg3: memref<2x4xf32, #tpu.memory_space<vmem>>) attributes {dimension_semantics = [#tpu.dimension_semantics<parallel>], iteration_bounds = array<i64: 1>, scalar_prefetch = 0 : i64, scratch_operands = 0 : i64, tpu.core_type = #tpu.core_type<tc>, window_params = [{transform_indices = @transform_0, window_bounds = array<i64: 2, 128>}, {pipeline_mode = #tpu.pipeline_mode<synchronous>, transform_indices = @transform_1, window_bounds = array<i64: 1, 128>}, {transform_indices = @transform_2, window_bounds = array<i64: 2, 4>}]} {
    %c0 = arith.constant 0 : index
    %c0_0 = arith.constant 0 : index
    %0 = vector.load %arg1[%c0, %c0_0] : memref<2x128xf32, #tpu.memory_space<vmem>>, vector<2x128xf32>
    %c0_1 = arith.constant 0 : index
    %c0_2 = arith.constant 0 : index
    %1 = vector.load %arg2[%c0_1, %c0_2] : memref<1x128xf32, #tpu.memory_space<vmem>>, vector<1x128xf32>
    %2 = vector.broadcast %1 : vector<1x128xf32> to vector<2x128xf32>
    %3 = arith.mulf %0, %2 : vector<2x128xf32>
    %4 = vector.shape_cast %3 : vector<2x128xf32> to vector<2x4x32xf32>
    %cst = arith.constant dense<0.000000e+00> : vector<2x4xf32>
    %5 = vector.multi_reduction <add>, %4, %cst [2] : vector<2x4x32xf32> to vector<2x4xf32>
    %c0_3 = arith.constant 0 : index
    %c0_4 = arith.constant 0 : index
    %6 = vector.load %arg3[%c0_3, %c0_4] : memref<2x4xf32, #tpu.memory_space<vmem>>, vector<2x4xf32>
    tpu.vector_store %arg3[%c0_3, %c0_4], %5 {strides = array<i32>} : memref<2x4xf32, #tpu.memory_space<vmem>>, vector<2x4xf32>,
    return
  }
  func.func @transform_0(%arg0: i32) -> (i32, i32) {
    %c0_i32 = arith.constant 0 : i32
    %c0_i32_0 = arith.constant 0 : i32
    return %arg0, %c0_i32 : i32, i32
  }
  func.func @transform_1(%arg0: i32) -> (i32, i32) {
    %c0_i32 = arith.constant 0 : i32
    %c0_i32_0 = arith.constant 0 : i32
    %c0_i32_1 = arith.constant 0 : i32
    return %c0_i32, %c0_i32_0 : i32, i32
  }
  func.func @transform_2(%arg0: i32) -> (i32, i32) {
    %c0_i32 = arith.constant 0 : i32
    %c0_i32_0 = arith.constant 0 : i32
    return %arg0, %c0_i32 : i32, i32
  }
}

</mosaic_0001>

<bundles_post_ra>
// kernel: tpu_custom_call.1
= control target key start
LH: loop header
LB: loop body
LE: loop exit
PB: predicated region body
PF: predicated region fallthrough
CT: control target
= control target key end

     0   :  { %7 = vsyncpa [#allocation3], 0  ;;  %s214_s0 = inlined_call_operand.hbm [shape: f32[2,128], index: 0, kind: input, shape index: {}]   ;;  %s215_s1 = inlined_call_operand.vmem [shape: f32[1,128], index: 1, kind: input, shape index: {}]   ;;  %s216_s2 = inlined_call_operand.hbm [shape: f32[2,4], index: 2, kind: output, shape index: {}]  }
   0x1   :  { %8 = vsyncpa [#allocation4], 0  ;;  %s164_s9 = smov [#allocation2]   ;;  %s116_s13 = scalar_lea.hbm %s214_s0, 32 }
   0x2   :  { %s15_s10 = sshll.u32 %s164_s9, 4  ;;  %p117_p0 = scmp.ne.s32.totalorder %s214_s0, %s116_s13  ;;  %s16_s10 = int_to_ptr.vmem [resolvable:$true] %s15_s10 }
   0x3   :  { %p120_p1 = scmp.lt.u32.totalorder %s116_s13, %s214_s0 }
   0x5   :  { %p122_p2 = pnand %p120_p1, %p117_p0 }
   0x7   :  { %125 = shalt.err (!%p122_p2)
}
   0x8   :  { %s126_s18 = scalar_lea.vmem %s16_s10, 32  ;;  %p131_p4 = scmp.lt.s32.totalorder %s16_s10, %s16_s10 }
   0x9   :  { %p127_p3 = scmp.ne.s32.totalorder %s16_s10, %s126_s18  ;;  %p132_p5 = scmp.lt.s32.totalorder %s126_s18, %s126_s18 }
   0xb   :  { %p133_p6 = por %p132_p5, %p131_p4 }
   0xd   :  { %p134_p7 = pnand %p133_p6, %p127_p3 }
   0xf   :  { %137 = shalt.err (!%p134_p7)
}
  0x10   :  { %18 = dma.hbm_to_vmem [thread:$0]  %s214_s0, 32, %s16_s10, [#allocation3]  }
  0x11   :  { %160 = dma.done.wait [#allocation3], 32  }
  0x12   :  { %161 = vsyncadd [#allocation3], 4294967264  ;;  %v24_v0 = vld [vmem:[#allocation2] sm:$0x3]  ;;  %v47_v3 = vlaneseq  ;;  %s165_s23 = smov 32   ;;  %s166_s24 = smov 96  }
  0x13   :  { %v107_v1 = vld [vmem:[%s215_s1] ss:$0 sm:$0xff]  ;;  %s167_s25 = smov 64   ;;  %v168_v7 = vmov 1983009808   ;;  %vm68_vm0 = vcmask 257024  }
  0x14   :  { %v32_v2 = vmul.f32 %v107_v1, %v24_v0  ;;  %v48_v4 = vshrl.u32 %v47_v3, 7  ;;  %v78_v5 = vand.u32 127, %v47_v3  ;;  %v45_v8 = vunpack.c.l.s4 %v168_v7  ;;  %s171_s0 = smov [#allocation5]  }
  0x15   :  { %v169_v10 = vmov 1934713408   ;;  %v170_v25 = vmov 0.0   ;;  %s98_s1 = sshll.u32 %s171_s0, 4  ;;  %vm87_vm1 = vcmask 1041409   ;;  %vm90_vm2 = vcmask 25600   ;;  %s99_s1 = int_to_ptr.vmem [resolvable:$true] %s98_s1 }
  0x16   :  { %40 = vrot.lane.b32.xlu1 %v32_v2, %s165_s23  ;;  %34 = vrot.lane.b32.xlu0 %v32_v2, %s166_s24  ;;  %v81_v6 = vsub.s32 %v78_v5, %v48_v4  ;;  %v46_v9 = vunpack.c.0.s8 %v45_v8  ;;  %v61_v11 = vunpack.c.l.s4 %v169_v10  ;;  %s138_s26 = scalar_lea.vmem %s99_s1, 32  ;;  %p143_p9 = scmp.lt.s32.totalorder %s99_s1, %s99_s1 }
  0x17   :  { %p139_p8 = scmp.ne.s32.totalorder %s99_s1, %s138_s26  ;;  %p144_p10 = scmp.lt.s32.totalorder %s138_s26, %s138_s26 }
  0x18   :  { %v49_v14 = vsub.s32 %v46_v9, %v48_v4  ;;  %v62_v16 = vunpack.c.0.s8 %v61_v11 }
  0x19   :  { %p145_p11 = por %p144_p10, %p143_p9 }
  0x1a   :  { %37 = vrot.lane.b32.xlu0 %v32_v2, %s167_s25  ;;  %v65_v21 = vsub.s32 %v62_v16, %v48_v4 }
  0x1b   :  { %p146_p12 = pnand %p145_p11, %p139_p8 }
  0x88   :  { %v41_v12 = vpop.permute.xlu1 %40  ;;  %v35_v13 = vpop.permute.xlu0 %34 }
  0x89   :  { %v51_v15 = vcombine.low %v35_v13, %v41_v12 }
  0x8b   :  { %v58_v19 = vrot.slane %v51_v15, %v49_v14 }
  0x8c   :  { %v38_v17 = vpop.permute.xlu0 %37 }
  0x8d   :  { %v43_v18 = vcombine.low %v32_v2, %v38_v17 }
  0x8f   :  { %v50_v20 = vrot.slane %v43_v18, %v49_v14 }
  0x91   :  { %v59_v22 = vcombine.low %v50_v20, %v58_v19 }
  0x93   :  { %v66_v23 = vrot.slane %v59_v22, %v65_v21 }
  0x95   :  { %v69_v24 = vsel %vm68_vm0, %v66_v23, 0.0  ;;  %v67_v26 = vcombine.high %v66_v23, %v170_v25 }
  0x96   :  { %70 = vadd.xlane.f32.xlu1 %v69_v24 }
  0x97   :  { %v72_v27 = vsel %vm68_vm0, %v67_v26, 0.0 }
  0x98   :  { %73 = vadd.xlane.f32.xlu0 %v72_v27 }
 0x123   :  { %v71_v28 = vpop.xlane.xlu1 %70 }
 0x124   :  { %v82_v30 = vrot.slane %v71_v28, %v81_v6 }
 0x125   :  { %v74_v29 = vpop.xlane.xlu0 %73 }
 0x126   :  { %v86_v31 = vrot.slane %v74_v29, %v81_v6 }
 0x128   :  { %v88_v32 = vsel %vm87_vm1, %v86_v31, %v82_v30 }
 0x129   :  { %91 = vst.msk [vmem:[#allocation5] sm:$0x3] %vm90_vm2, %v88_v32 }
 0x12a   :  { %149 = shalt.err (!%p146_p12)
}
 0x12b   :  { %s150_s29 = scalar_lea.hbm %s216_s2, 32 }
 0x12c   :  { %p151_p13 = scmp.ne.s32.totalorder %s216_s2, %s150_s29  ;;  %p154_p0 = scmp.lt.u32.totalorder %s150_s29, %s216_s2 }
 0x12e   :  { %p156_p1 = pnand %p154_p0, %p151_p13 }
 0x130   :  { %159 = shalt.err (!%p156_p1)
}
 0x131   :  { %101 = dma.vmem_to_hbm [thread:$0]  %s99_s1, 32, %s216_s2, [#allocation4]  }
 0x132   :  { %162 = dma.done.wait [#allocation4], 32  }
 0x133   :  { %163 = vsyncadd [#allocation4], 4294967264 }
 0x134   :  { %105 = vsyncpa [#allocation3], 1 }
 0x135   :  { %106 = vsyncpa [#allocation4], 1 }

</bundles_post_ra>
